<compile_context>
chip_gen: v7x
topology: tpu7x:2x2x1
jax: 0.10.0
libtpu: 0.0.40
codegen_flags: <defaults>
</compile_context>

<pallas_src>
import jax
import jax.numpy as jnp
from jax import lax
from jax.experimental import pallas as pl
from jax.experimental.pallas import tpu as pltpu


def _round_up(x, m):
    return ((x + m - 1) // m) * m


def _cdiv(a, b):
    return -(-a // b)


# ---------------------------------------------------------------------------
# Pallas kernel: fused 4-layer MLP (3x ReLU hidden, linear head)
# ---------------------------------------------------------------------------
def critic_mlp_kernel(x_ref,
                      w1_ref, b1_ref,
                      w2_ref, b2_ref,
                      w3_ref, b3_ref,
                      w4_ref, b4_ref,
                      o_ref):
    f32 = jnp.float32
    bf16 = jnp.bfloat16

    x = x_ref[...].astype(bf16)                                    # (TB, D)

    # Hidden layers: bf16 x bf16 on the MXU with f32 accumulation, f32 bias,
    # then the activation is re-materialised in bf16 (halves the intermediate
    # VMEM traffic; the next matmul consumes bf16 anyway).
    h = jnp.dot(x, w1_ref[...], preferred_element_type=f32)
    h = jnp.maximum(h + b1_ref[...], 0.0).astype(bf16)             # (TB, F1)

    h = jnp.dot(h, w2_ref[...], preferred_element_type=f32)
    h = jnp.maximum(h + b2_ref[...], 0.0).astype(bf16)             # (TB, F2)

    h = jnp.dot(h, w3_ref[...], preferred_element_type=f32)
    h = jnp.maximum(h + b3_ref[...], 0.0)                          # (TB, F2) f32

    # Head (out_features == 1): contract the feature axis of the f32 (1, F2)
    # head row against h so the result comes out directly as a lane-dense
    # (1, TB) row -> unmasked stores and a contiguous output writeback.
    v = lax.dot_general(w4_ref[...], h,
                        dimension_numbers=(((1,), (1,)), ((), ())),
                        preferred_element_type=f32)                # (1, TB)
    o_ref[...] = v + b4_ref[...]                                   # b4: (1, 1)


# ---------------------------------------------------------------------------
# Tiling / VMEM helpers
# ---------------------------------------------------------------------------
def _choose_tiling(B, block_b):
    """Pick (tile_rows, padded_batch_rows, grid_steps) for the batch axis."""
    Bp = _round_up(max(int(B), 1), 16)            # bf16 sublane pack (16 rows)
    target = max(128, _round_up(int(block_b), 128))
    if Bp < 256:
        # Too small to split usefully: one tile covering the whole batch.
        return Bp, Bp, 1
    # >= 2 grid steps (keeps both v7x TensorCores busy via "parallel"),
    # even when possible, and 128-row-aligned tiles for lane-dense output.
    steps = max(2, _cdiv(Bp, target))
    if steps % 2:
        steps += 1
    bb = _round_up(_cdiv(Bp, steps), 128)
    steps = _cdiv(Bp, bb)
    return bb, steps * bb, steps


def _vmem_budget_bytes(bb, D, F1, F2):
    """Scoped-VMEM limit derived from the actual buffers (+2x headroom)."""
    f32b, bf16b = 4, 2
    io = 2 * bb * D * f32b + 2 * bb * f32b                 # dbl-buffered x + out
    params = 2 * ((D * F1 + F1 * F2 + F2 * F2) * bf16b     # bf16 weights
                  + (F1 + 3 * F2 + 1) * f32b)              # f32 biases + head
    inter = bb * (F1 * bf16b + F2 * bf16b + 2 * F2 * f32b) + bb * f32b
    total = io + params + inter
    return int(min(max(2 * total, 4 * 1024 * 1024), 48 * 1024 * 1024))


# ---------------------------------------------------------------------------
# Wrapper
# ---------------------------------------------------------------------------
def _pallas_critic_call(state_pad, kparams, *, bb, grid_n, vmem_limit_bytes):
    w1, b1, w2, b2, w3, b3, w4_row, b4 = kparams
    B_pad, D = state_pad.shape
    F1 = w1.shape[1]
    F2 = w2.shape[1]

    def const_spec(shape):
        # Constant-index blocks: DMA'd once, kernel sees the full array.
        return pl.BlockSpec(shape, lambda i: (0, 0))

    return pl.pallas_call(
        critic_mlp_kernel,
        out_shape=jax.ShapeDtypeStruct((1, B_pad), jnp.float32),
        grid_spec=pltpu.PrefetchScalarGridSpec(
            num_scalar_prefetch=0,
            grid=(grid_n,),
            in_specs=[
                pl.BlockSpec((bb, D), lambda i: (i, 0)),    # state tile
                const_spec((D, F1)),  const_spec((1, F1)),  # layer 1
                const_spec((F1, F2)), const_spec((1, F2)),  # layer 2
                const_spec((F2, F2)), const_spec((1, F2)),  # layer 3
                const_spec((1, F2)),  const_spec((1, 1)),   # head
            ],
            # Lane-dense output: one (1, bb) f32 row per grid step.
            out_specs=pl.BlockSpec((1, bb), lambda i: (0, i)),
        ),
        compiler_params=pltpu.CompilerParams(
            dimension_semantics=("parallel",),
            vmem_limit_bytes=vmem_limit_bytes),
    )(state_pad, w1, b1, w2, b2, w3, b3, w4_row, b4)


def critic_forward(state, params, *, block_b=512):
    """state: (B, D) float32.  Returns value: (B, 1) float32."""
    w1, b1, w2, b2, w3, b3, w4, b4 = params
    B, D = state.shape
    F1 = w1.shape[1]
    F2 = w2.shape[1]

    bb, B_pad, grid_n = _choose_tiling(B, block_b)

    state = state.astype(jnp.float32)
    if B_pad != B:
        state = jnp.pad(state, ((0, B_pad - B), (0, 0)))

    bf16, f32 = jnp.bfloat16, jnp.float32
    kparams = (
        # bf16 hidden weights: halves weight HBM traffic; MXU is bf16-native.
        w1.astype(bf16), b1.reshape(1, F1).astype(f32),
        w2.astype(bf16), b2.reshape(1, F2).astype(f32),
        w3.astype(bf16), b3.reshape(1, F2).astype(f32),
        # Head weight as a lane-dense f32 row; bias f32.
        w4.reshape(1, F2).astype(f32),
        b4.reshape(1, 1).astype(f32),
    )

    out = _pallas_critic_call(
        state, kparams, bb=bb, grid_n=grid_n,
        vmem_limit_bytes=_vmem_budget_bytes(bb, D, F1, F2))
    return out[0, :B].reshape(B, 1)


# ---------------------------------------------------------------------------
# Pure-JAX reference mirroring the kernel math (bf16 hidden weights /
# activations, f32 biases and f32 head).
# ---------------------------------------------------------------------------
def critic_forward_ref(state, params):
    w1, b1, w2, b2, w3, b3, w4, b4 = params
    f32, bf16 = jnp.float32, jnp.bfloat16

    def hidden(x, w, b):
        y = jnp.dot(x.astype(bf16), w.astype(bf16), preferred_element_type=f32)
        return jnp.maximum(y + b.astype(f32), 0.0)

    h = hidden(state.astype(f32), w1, b1).astype(bf16)
    h = hidden(h, w2, b2).astype(bf16)
    h = hidden(h, w3, b3)                                  # (B, F2) f32
    return (jnp.dot(h, w4.astype(f32),
                    precision=jax.lax.Precision.HIGHEST)
            + b4.reshape(1, 1).astype(f32))


# ---------------------------------------------------------------------------
# Deterministic parameter init (mirrors nn.init.orthogonal_ on weights)
# ---------------------------------------------------------------------------
def orthogonal_weight(key, out_dim, in_dim):
    rows, cols = out_dim, in_dim
    flat = jax.random.normal(key, (max(rows, cols), min(rows, cols)),
                             dtype=jnp.float32)
    q, r = jnp.linalg.qr(flat)
    q = q * jnp.sign(jnp.diag(r))
    if rows < cols:
        q = q.T
    return q[:rows, :cols]


def bias_init(key, fan_in, out_dim):
    bound = 1.0 / jnp.sqrt(jnp.float32(fan_in))
    return jax.random.uniform(key, (out_dim,), jnp.float32, -bound, bound)


def make_params(key, input_dim, fc1_dims=256, fc2_dims=256):
    ks = jax.random.split(key, 8)
    # PyTorch stores W as (out, in); kernel wants (in, out) -> transpose here.
    w1 = orthogonal_weight(ks[0], fc1_dims, input_dim).T      # (D,  F1)
    b1 = bias_init(ks[1], input_dim, fc1_dims)
    w2 = orthogonal_weight(ks[2], fc2_dims, fc1_dims).T       # (F1, F2)
    b2 = bias_init(ks[3], fc1_dims, fc2_dims)
    w3 = orthogonal_weight(ks[4], fc2_dims, fc1_dims).T       # (F1, F2)
    b3 = bias_init(ks[5], fc1_dims, fc2_dims)
    w4 = orthogonal_weight(ks[6], 1, fc2_dims).T              # (F2, 1)
    b4 = bias_init(ks[7], fc2_dims, 1)
    return (w1, b1, w2, b2, w3, b3, w4, b4)


# ---------------------------------------------------------------------------
if __name__ == "__main__":
    key = jax.random.PRNGKey(0)
    k_param, k_s1, k_s2, k_s3 = jax.random.split(key, 4)

    input_dim = 32          # input_dims = (32,)
    fc1_dims = fc2_dims = 256
    params = make_params(k_param, input_dim, fc1_dims, fc2_dims)

    # Tolerance note: hidden layers use identical bf16 math on both sides; the
    # f32 head may run at MXU default precision inside the kernel vs HIGHEST
    # in the reference, so allow a small slack.
    ATOL = RTOL = 2e-2

    # 1) Tiny batch: single grid step, tile == padded batch.
    s = jax.random.normal(k_s1, (8, input_dim), dtype=jnp.float32)
    v = jax.block_until_ready(critic_forward(s, params))
    r = critic_forward_ref(s, params)
    assert v.shape == (8, 1)
    assert jnp.allclose(v, r, atol=ATOL, rtol=RTOL), "mismatch (small batch)"

    # 2) Non-multiple batch: zero-padding + 2 balanced 256-row tiles
    #    ("parallel" grid -> both v7x TensorCores), lane-dense output rows.
    s = jax.random.normal(k_s2, (300, input_dim), dtype=jnp.float32)
    v = jax.block_until_ready(critic_forward(s, params))
    r = critic_forward_ref(s, params)
    assert v.shape == (300, 1)
    assert jnp.allclose(v, r, atol=ATOL, rtol=RTOL), "mismatch (padded batch)"

    # 3) Larger batch with an explicit smaller tile: 4-step pipelined grid.
    s = jax.random.normal(k_s3, (1024, input_dim), dtype=jnp.float32)
    v = jax.block_until_ready(critic_forward(s, params, block_b=256))
    r = critic_forward_ref(s, params)
    assert v.shape == (1024, 1)
    assert jnp.allclose(v, r, atol=ATOL, rtol=RTOL), "mismatch (large batch)"

    print("KERNEL_OK")
</pallas_src>

<mosaic_0001>
module attributes {stable_mosaic.version = 11 : i64} {
  func.func @critic_mlp_kernel(%arg0: i32, %arg1: memref<16x32xf32, #tpu.memory_space<vmem>>, %arg2: memref<32x256xbf16, #tpu.memory_space<vmem>>, %arg3: memref<1x256xf32, #tpu.memory_space<vmem>>, %arg4: memref<256x256xbf16, #tpu.memory_space<vmem>>, %arg5: memref<1x256xf32, #tpu.memory_space<vmem>>, %arg6: memref<256x256xbf16, #tpu.memory_space<vmem>>, %arg7: memref<1x256xf32, #tpu.memory_space<vmem>>, %arg8: memref<1x256xf32, #tpu.memory_space<vmem>>, %arg9: memref<1x1xf32, #tpu.memory_space<vmem>>, %arg10: memref<1x16xf32, #tpu.memory_space<vmem>>) attributes {dimension_semantics = [#tpu.dimension_semantics<parallel>], iteration_bounds = array<i64: 1>, scalar_prefetch = 0 : i64, scratch_operands = 0 : i64, tpu.core_type = #tpu.core_type<tc>, window_params = [{transform_indices = @transform_0, window_bounds = array<i64: 16, 32>}, {pipeline_mode = #tpu.pipeline_mode<synchronous>, transform_indices = @transform_1, window_bounds = array<i64: 32, 256>}, {pipeline_mode = #tpu.pipeline_mode<synchronous>, transform_indices = @transform_2, window_bounds = array<i64: 1, 256>}, {pipeline_mode = #tpu.pipeline_mode<synchronous>, transform_indices = @transform_3, window_bounds = array<i64: 256, 256>}, {pipeline_mode = #tpu.pipeline_mode<synchronous>, transform_indices = @transform_4, window_bounds = array<i64: 1, 256>}, {pipeline_mode = #tpu.pipeline_mode<synchronous>, transform_indices = @transform_5, window_bounds = array<i64: 256, 256>}, {pipeline_mode = #tpu.pipeline_mode<synchronous>, transform_indices = @transform_6, window_bounds = array<i64: 1, 256>}, {pipeline_mode = #tpu.pipeline_mode<synchronous>, transform_indices = @transform_7, window_bounds = array<i64: 1, 256>}, {pipeline_mode = #tpu.pipeline_mode<synchronous>, transform_indices = @transform_8, window_bounds = array<i64: 1, 1>}, {transform_indices = @transform_9, window_bounds = array<i64: 1, 16>}]} {
    %c0 = arith.constant 0 : index
    %c0_0 = arith.constant 0 : index
    %0 = vector.load %arg1[%c0, %c0_0] : memref<16x32xf32, #tpu.memory_space<vmem>>, vector<16x32xf32>
    %1 = arith.truncf %0 : vector<16x32xf32> to vector<16x32xbf16>
    %c0_1 = arith.constant 0 : index
    %c0_2 = arith.constant 0 : index
    %2 = vector.load %arg2[%c0_1, %c0_2] : memref<32x256xbf16, #tpu.memory_space<vmem>>, vector<32x256xbf16>
    %cst = arith.constant dense<0.000000e+00> : vector<16x256xf32>
    %3 = tpu.matmul %1, %2, %cst {dimension_numbers = #tpu.dot_dimension_numbers<[1], [0], [0], [1], [0, 0, 1, 1], [], []>} : vector<16x32xbf16>, vector<32x256xbf16>, vector<16x256xf32> -> vector<16x256xf32>
    %c0_3 = arith.constant 0 : index
    %c0_4 = arith.constant 0 : index
    %4 = vector.load %arg3[%c0_3, %c0_4] : memref<1x256xf32, #tpu.memory_space<vmem>>, vector<1x256xf32>
    %5 = vector.broadcast %4 : vector<1x256xf32> to vector<16x256xf32>
    %6 = arith.addf %3, %5 : vector<16x256xf32>
    %cst_5 = arith.constant 0.000000e+00 : f32
    %7 = vector.broadcast %cst_5 : f32 to vector<16x256xf32>
    %8 = arith.maximumf %6, %7 : vector<16x256xf32>
    %9 = arith.truncf %8 : vector<16x256xf32> to vector<16x256xbf16>
    %c0_6 = arith.constant 0 : index
    %c0_7 = arith.constant 0 : index
    %10 = vector.load %arg4[%c0_6, %c0_7] : memref<256x256xbf16, #tpu.memory_space<vmem>>, vector<256x256xbf16>
    %cst_8 = arith.constant dense<0.000000e+00> : vector<16x256xf32>
    %11 = tpu.matmul %9, %10, %cst_8 {dimension_numbers = #tpu.dot_dimension_numbers<[1], [0], [0], [1], [0, 0, 1, 1], [], []>} : vector<16x256xbf16>, vector<256x256xbf16>, vector<16x256xf32> -> vector<16x256xf32>
    %c0_9 = arith.constant 0 : index
    %c0_10 = arith.constant 0 : index
    %12 = vector.load %arg5[%c0_9, %c0_10] : memref<1x256xf32, #tpu.memory_space<vmem>>, vector<1x256xf32>
    %13 = vector.broadcast %12 : vector<1x256xf32> to vector<16x256xf32>
    %14 = arith.addf %11, %13 : vector<16x256xf32>
    %cst_11 = arith.constant 0.000000e+00 : f32
    %15 = vector.broadcast %cst_11 : f32 to vector<16x256xf32>
    %16 = arith.maximumf %14, %15 : vector<16x256xf32>
    %17 = arith.truncf %16 : vector<16x256xf32> to vector<16x256xbf16>
    %c0_12 = arith.constant 0 : index
    %c0_13 = arith.constant 0 : index
    %18 = vector.load %arg6[%c0_12, %c0_13] : memref<256x256xbf16, #tpu.memory_space<vmem>>, vector<256x256xbf16>
    %cst_14 = arith.constant dense<0.000000e+00> : vector<16x256xf32>
    %19 = tpu.matmul %17, %18, %cst_14 {dimension_numbers = #tpu.dot_dimension_numbers<[1], [0], [0], [1], [0, 0, 1, 1], [], []>} : vector<16x256xbf16>, vector<256x256xbf16>, vector<16x256xf32> -> vector<16x256xf32>
    %c0_15 = arith.constant 0 : index
    %c0_16 = arith.constant 0 : index
    %20 = vector.load %arg7[%c0_15, %c0_16] : memref<1x256xf32, #tpu.memory_space<vmem>>, vector<1x256xf32>
    %21 = vector.broadcast %20 : vector<1x256xf32> to vector<16x256xf32>
    %22 = arith.addf %19, %21 : vector<16x256xf32>
    %cst_17 = arith.constant 0.000000e+00 : f32
    %23 = vector.broadcast %cst_17 : f32 to vector<16x256xf32>
    %24 = arith.maximumf %22, %23 : vector<16x256xf32>
    %c0_18 = arith.constant 0 : index
    %c0_19 = arith.constant 0 : index
    %25 = vector.load %arg8[%c0_18, %c0_19] : memref<1x256xf32, #tpu.memory_space<vmem>>, vector<1x256xf32>
    %cst_20 = arith.constant dense<0.000000e+00> : vector<1x16xf32>
    %26 = tpu.matmul %25, %24, %cst_20 {dimension_numbers = #tpu.dot_dimension_numbers<[1], [1], [0], [0], [0, 0, 1, 0], [], []>} : vector<1x256xf32>, vector<16x256xf32>, vector<1x16xf32> -> vector<1x16xf32>
    %c0_21 = arith.constant 0 : index
    %c0_22 = arith.constant 0 : index
    %27 = vector.load %arg9[%c0_21, %c0_22] : memref<1x1xf32, #tpu.memory_space<vmem>>, vector<1x1xf32>
    %28 = vector.broadcast %27 : vector<1x1xf32> to vector<1x16xf32>
    %29 = arith.addf %26, %28 : vector<1x16xf32>
    %c0_23 = arith.constant 0 : index
    %c0_24 = arith.constant 0 : index
    %30 = vector.load %arg10[%c0_23, %c0_24] : memref<1x16xf32, #tpu.memory_space<vmem>>, vector<1x16xf32>
    tpu.vector_store %arg10[%c0_23, %c0_24], %29 {strides = array<i32>} : memref<1x16xf32, #tpu.memory_space<vmem>>, vector<1x16xf32>,
    return
  }
  func.func @transform_0(%arg0: i32) -> (i32, i32) {
    %c0_i32 = arith.constant 0 : i32
    %c0_i32_0 = arith.constant 0 : i32
    return %arg0, %c0_i32 : i32, i32
  }
  func.func @transform_1(%arg0: i32) -> (i32, i32) {
    %c0_i32 = arith.constant 0 : i32
    %c0_i32_0 = arith.constant 0 : i32
    %c0_i32_1 = arith.constant 0 : i32
    return %c0_i32, %c0_i32_0 : i32, i32
  }
  func.func @transform_2(%arg0: i32) -> (i32, i32) {
    %c0_i32 = arith.constant 0 : i32
    %c0_i32_0 = arith.constant 0 : i32
    %c0_i32_1 = arith.constant 0 : i32
    return %c0_i32, %c0_i32_0 : i32, i32
  }
  func.func @transform_3(%arg0: i32) -> (i32, i32) {
    %c0_i32 = arith.constant 0 : i32
    %c0_i32_0 = arith.constant 0 : i32
    %c0_i32_1 = arith.constant 0 : i32
    return %c0_i32, %c0_i32_0 : i32, i32
  }
  func.func @transform_4(%arg0: i32) -> (i32, i32) {
    %c0_i32 = arith.constant 0 : i32
    %c0_i32_0 = arith.constant 0 : i32
    %c0_i32_1 = arith.constant 0 : i32
    return %c0_i32, %c0_i32_0 : i32, i32
  }
  func.func @transform_5(%arg0: i32) -> (i32, i32) {
    %c0_i32 = arith.constant 0 : i32
    %c0_i32_0 = arith.constant 0 : i32
    %c0_i32_1 = arith.constant 0 : i32
    return %c0_i32, %c0_i32_0 : i32, i32
  }
  func.func @transform_6(%arg0: i32) -> (i32, i32) {
    %c0_i32 = arith.constant 0 : i32
    %c0_i32_0 = arith.constant 0 : i32
    %c0_i32_1 = arith.constant 0 : i32
    return %c0_i32, %c0_i32_0 : i32, i32
  }
  func.func @transform_7(%arg0: i32) -> (i32, i32) {
    %c0_i32 = arith.constant 0 : i32
    %c0_i32_0 = arith.constant 0 : i32
    %c0_i32_1 = arith.constant 0 : i32
    return %c0_i32, %c0_i32_0 : i32, i32
  }
  func.func @transform_8(%arg0: i32) -> (i32, i32) {
    %c0_i32 = arith.constant 0 : i32
    %c0_i32_0 = arith.constant 0 : i32
    %c0_i32_1 = arith.constant 0 : i32
    return %c0_i32, %c0_i32_0 : i32, i32
  }
  func.func @transform_9(%arg0: i32) -> (i32, i32) {
    %c0_i32 = arith.constant 0 : i32
    %c0_i32_0 = arith.constant 0 : i32
    return %c0_i32, %arg0 : i32, i32
  }
}

</mosaic_0001>

<bundles_post_ra>
// kernel: tpu_custom_call.1
= control target key start
LH: loop header
LB: loop body
LE: loop exit
PB: predicated region body
PF: predicated region fallthrough
CT: control target
= control target key end

     0   :  { %s1266_s0 = inlined_call_operand.hbm [shape: f32[16,32], index: 0, kind: input, shape index: {}]   ;;  %s1267_s1 = inlined_call_operand.hbm [shape: bf16[32,256], index: 1, kind: input, shape index: {}]   ;;  %s1268_s2 = inlined_call_operand.vmem [shape: f32[1,256], index: 2, kind: input, shape index: {}]   ;;  %s1269_s3 = inlined_call_operand.hbm [shape: bf16[256,256], index: 3, kind: input, shape index: {}]   ;;  %s1270_s4 = inlined_call_operand.vmem [shape: f32[1,256], index: 4, kind: input, shape index: {}]   ;;  %s1271_s5 = inlined_call_operand.hbm [shape: bf16[256,256], index: 5, kind: input, shape index: {}]   ;;  %s1272_s6 = inlined_call_operand.vmem [shape: f32[1,256], index: 6, kind: input, shape index: {}]   ;;  %s1273_s7 = inlined_call_operand.vmem [shape: f32[1,256], index: 7, kind: input, shape index: {}]   ;;  %s1274_s8 = inlined_call_operand.<no memory space> [shape: f32[1,1], index: 8, kind: input, shape index: {}]   ;;  %s1275_s9 = inlined_call_operand.hbm [shape: f32[1,16], index: 9, kind: output, shape index: {}]  }
   0x1   :  { %v14_v0 = vstv %s1274_s8 }
   0x2   :  { %15 = vst [vmem:[#allocation2] sm:$0x1] %v14_v0 }
   0x3   :  { %16 = vsyncpa [#allocation4], 0 }
   0x4   :  { %17 = vsyncpa [#allocation7], 0 }
   0x5   :  { %18 = vsyncpa [#allocation10], 0 }
   0x6   :  { %19 = vsyncpa [#allocation5], 0  ;;  %s1100_s11 = smov [#allocation6]   ;;  %s1101_s13 = smov [#allocation3]  }
   0x7   :  { %s37_s12 = sshll.u32 %s1100_s11, 4  ;;  %s25_s14 = sshll.u32 %s1101_s13, 4  ;;  %s38_s12 = int_to_ptr.vmem [resolvable:$true] %s37_s12  ;;  %s1161_s14 = int_to_ptr.vmem [resolvable:$true] %s25_s14 }
   0x8   :  { %s982_s17 = scalar_lea.hbm %s1267_s1, 512 }
   0x9   :  { %p983_p0 = scmp.ne.s32.totalorder %s1267_s1, %s982_s17  ;;  %p986_p1 = scmp.lt.u32.totalorder %s982_s17, %s1267_s1 }
   0xb   :  { %p988_p2 = pnand %p986_p1, %p983_p0 }
   0xd   :  { %991 = shalt.err (!%p988_p2)
}
   0xe   :  { %s992_s21 = scalar_lea.vmem %s38_s12, 512  ;;  %p997_p4 = scmp.lt.s32.totalorder %s38_s12, %s38_s12 }
   0xf   :  { %p993_p3 = scmp.ne.s32.totalorder %s38_s12, %s992_s21  ;;  %p998_p5 = scmp.lt.s32.totalorder %s992_s21, %s992_s21 }
  0x11   :  { %p999_p6 = por %p998_p5, %p997_p4 }
  0x13   :  { %p1000_p7 = pnand %p999_p6, %p993_p3 }
  0x15   :  { %1003 = shalt.err (!%p1000_p7)
}
  0x16   :  { %s1102_s22 = smov 128   ;;  %s1103_s23 = smov 8  }
  0x17   :  { %43 = dma.hbm_to_vmem [thread:$0]  %s1267_s1, 512, %s38_s12, [#allocation7], %s1102_s22, %s1102_s22, %s1103_s23  }
  0x18   :  { %s1004_s28 = scalar_lea.hbm %s1266_s0, 256 }
  0x19   :  { %p1005_p8 = scmp.ne.s32.totalorder %s1266_s0, %s1004_s28  ;;  %p1008_p9 = scmp.lt.u32.totalorder %s1004_s28, %s1266_s0 }
  0x1b   :  { %p1010_p10 = pnand %p1008_p9, %p1005_p8 }
  0x1d   :  { %1013 = shalt.err (!%p1010_p10)
}
  0x1e   :  { %s1014_s13 = scalar_lea.vmem %s1161_s14, 256  ;;  %p1019_p12 = scmp.lt.s32.totalorder %s1161_s14, %s1161_s14 }
  0x1f   :  { %p1015_p11 = scmp.ne.s32.totalorder %s1161_s14, %s1014_s13  ;;  %p1020_p13 = scmp.lt.s32.totalorder %s1014_s13, %s1014_s13 }
  0x21   :  { %p1021_p0 = por %p1020_p13, %p1019_p12 }
  0x23   :  { %p1022_p1 = pnand %p1021_p0, %p1015_p11 }
  0x25   :  { %1025 = shalt.err (!%p1022_p1)
}
  0x26   :  { %31 = dma.hbm_to_vmem [thread:$0]  %s1266_s0, 256, %s1161_s14, [#allocation4], %s1102_s22, %s1102_s22, %s1103_s23  }
  0x27   :  { %s1104_s15 = smov [#allocation8]   ;;  %s1105_s17 = smov [#allocation9]  }
  0x28   :  { %s51_s16 = sshll.u32 %s1104_s15, 4  ;;  %s65_s18 = sshll.u32 %s1105_s17, 4  ;;  %s52_s16 = int_to_ptr.vmem [resolvable:$true] %s51_s16  ;;  %s1198_s18 = int_to_ptr.vmem [resolvable:$true] %s65_s18 }
  0x29   :  { %s1026_s20 = scalar_lea.hbm %s1269_s3, 4096 }
  0x2a   :  { %p1027_p2 = scmp.ne.s32.totalorder %s1269_s3, %s1026_s20  ;;  %p1030_p3 = scmp.lt.u32.totalorder %s1026_s20, %s1269_s3 }
  0x2c   :  { %p1032_p4 = pnand %p1030_p3, %p1027_p2 }
  0x2e   :  { %1035 = shalt.err (!%p1032_p4)
}
  0x2f   :  { %s1036_s0 = scalar_lea.vmem %s52_s16, 4096  ;;  %p1041_p6 = scmp.lt.s32.totalorder %s52_s16, %s52_s16 }
  0x30   :  { %p1037_p5 = scmp.ne.s32.totalorder %s52_s16, %s1036_s0  ;;  %p1042_p7 = scmp.lt.s32.totalorder %s1036_s0, %s1036_s0 }
  0x32   :  { %p1043_p8 = por %p1042_p7, %p1041_p6 }
  0x34   :  { %p1044_p9 = pnand %p1043_p8, %p1037_p5 }
  0x36   :  { %1047 = shalt.err (!%p1044_p9)
}
  0x37   :  { %57 = dma.hbm_to_vmem [thread:$0]  %s1269_s3, 4096, %s52_s16, [#allocation7], %s1102_s22, %s1102_s22, %s1103_s23  }
  0x38   :  { %s1048_s30 = scalar_lea.hbm %s1271_s5, 4096 }
  0x39   :  { %p1049_p10 = scmp.ne.s32.totalorder %s1271_s5, %s1048_s30  ;;  %p1052_p11 = scmp.lt.u32.totalorder %s1048_s30, %s1271_s5 }
  0x3b   :  { %p1054_p12 = pnand %p1052_p11, %p1049_p10 }
  0x3d   :  { %1057 = shalt.err (!%p1054_p12)
}
  0x3e   :  { %s1058_s12 = scalar_lea.vmem %s1198_s18, 4096  ;;  %p1063_p0 = scmp.lt.s32.totalorder %s1198_s18, %s1198_s18 }
  0x3f   :  { %p1059_p13 = scmp.ne.s32.totalorder %s1198_s18, %s1058_s12  ;;  %p1064_p1 = scmp.lt.s32.totalorder %s1058_s12, %s1058_s12 }
  0x41   :  { %p1065_p2 = por %p1064_p1, %p1063_p0 }
  0x43   :  { %p1066_p3 = pnand %p1065_p2, %p1059_p13 }
  0x45   :  { %1069 = shalt.err (!%p1066_p3)
}
  0x46   :  { %71 = dma.hbm_to_vmem [thread:$0]  %s1271_s5, 4096, %s1198_s18, [#allocation10], %s1102_s22, %s1102_s22, %s1103_s23  }
  0x47   :  { %1092 = dma.done.wait [#allocation4], 256  }
  0x48   :  { %1093 = vsyncadd [#allocation4], 4294967040 }
  0x49   :  { %1094 = dma.done.wait [#allocation7], 4608  }
  0x4a   :  { %1095 = vsyncadd [#allocation7], 4294962688 }
  0x4b   :  { %1096 = dma.done.wait [#allocation10], 4096  }
  0x4c   :  { %1097 = vsyncadd [#allocation10], 4294963200  ;;  %v1106_v1 = vmov 0   ;;  %v880_v2 = vld [vmem:[#allocation6 + $0x4] ss:$8 sps:$4 sm:$0xff]   ;;  %v91_v6 = vld [vmem:[#allocation3] sm:$0xff] }
  0x4d   :  { %166 = vmatprep.mubr.bf16.mxu0 %v1106_v1  ;;  %879 = vset.pattern.permute.xlu0 %v1106_v1  ;;  %v882_v3 = vld [vmem:[#allocation6] ss:$8 sps:$4 sm:$0xff]   ;;  %v883_v4 = vld [vmem:[#allocation6 + $0x14] ss:$8 sps:$4 sm:$0xff]   ;;  %v885_v5 = vld [vmem:[#allocation6 + $0x10] ss:$8 sps:$4 sm:$0xff]  }
  0x4e   :  { %134 = vmatprep.subr.bf16.mxu0 %v880_v2  ;;  %v92_v7 = vld [vmem:[#allocation3 + $0x8] sm:$0xff]  ;;  %v886_v8 = vld [vmem:[#allocation8 + $0x4] ss:$8 sps:$4 sm:$0xff]   ;;  %v888_v9 = vld [vmem:[#allocation8] ss:$8 sps:$4 sm:$0xff]   ;;  %vm130_vm0 = vcmask 261120  }
  0x4f   :  { %135 = vmatpush1.bf16.msra.mxu0 %v882_v3  ;;  %v889_v10 = vld [vmem:[#allocation8 + $0x14] ss:$8 sps:$4 sm:$0xff]   ;;  %v93_v11 = vpack.c.bf16 %v92_v7, %v91_v6  ;;  %387 = vmatprep.subr.bf16.mxu1 %v886_v8  ;;  %v891_v12 = vld [vmem:[#allocation8 + $0x10] ss:$8 sps:$4 sm:$0xff]   ;;  %v892_v13 = vld [vmem:[#allocation8 + $0x24] ss:$8 sps:$4 sm:$0xff]  }
  0x50   :  { %136 = vmatprep.subr.bf16.mxu0 %v883_v4  ;;  %388 = vmatpush1.bf16.msra.mxu1 %v888_v9  ;;  %v894_v14 = vld [vmem:[#allocation8 + $0x20] ss:$8 sps:$4 sm:$0xff]   ;;  %v895_v15 = vld [vmem:[#allocation8 + $0x34] ss:$8 sps:$4 sm:$0xff]   ;;  %v897_v16 = vld [vmem:[#allocation8 + $0x30] ss:$8 sps:$4 sm:$0xff]  }
  0x51   :  { %389 = vmatprep.subr.bf16.mxu1 %v889_v10  ;;  %v898_v17 = vld [vmem:[#allocation8 + $0x44] ss:$8 sps:$4 sm:$0xff]   ;;  %v900_v18 = vld [vmem:[#allocation8 + $0x40] ss:$8 sps:$4 sm:$0xff]   ;;  %v901_v19 = vld [vmem:[#allocation8 + $0x54] ss:$8 sps:$4 sm:$0xff]  }
  0x52   :  { %v903_v20 = vld [vmem:[#allocation8 + $0x50] ss:$8 sps:$4 sm:$0xff]   ;;  %v904_v21 = vld [vmem:[#allocation8 + $0x64] ss:$8 sps:$4 sm:$0xff]   ;;  %v906_v22 = vld [vmem:[#allocation8 + $0x60] ss:$8 sps:$4 sm:$0xff]  }
  0x53   :  { %137 = vmatpush1.bf16.msra.mxu0 %v885_v5  ;;  %v907_v23 = vld [vmem:[#allocation8 + $0x74] ss:$8 sps:$4 sm:$0xff]   ;;  %v909_v24 = vld [vmem:[#allocation8 + $0x70] ss:$8 sps:$4 sm:$0xff]   ;;  %v910_v25 = vld [vmem:[#allocation8 + $0x84] ss:$8 sps:$4 sm:$0xff]   ;;  %v100_v5 = vlaneseq }
  0x54   :  { %390 = vmatpush1.bf16.msra.mxu1 %v891_v12  ;;  %v912_v26 = vld [vmem:[#allocation8 + $0x80] ss:$8 sps:$4 sm:$0xff]   ;;  %v913_v27 = vld [vmem:[#allocation8 + $0x94] ss:$8 sps:$4 sm:$0xff]   ;;  %v915_v28 = vld [vmem:[#allocation8 + $0x90] ss:$8 sps:$4 sm:$0xff]  }
  0x55   :  { %391 = vmatprep.subr.bf16.mxu1 %v892_v13  ;;  %v916_v29 = vld [vmem:[#allocation8 + $0xa4] ss:$8 sps:$4 sm:$0xff]   ;;  %v918_v30 = vld [vmem:[#allocation8 + $0xa0] ss:$8 sps:$4 sm:$0xff]   ;;  %v919_v31 = vld [vmem:[#allocation8 + $0xb4] ss:$8 sps:$4 sm:$0xff]  }
  0x56   :  { %802 = vmatmul.mubr.msk.bf16.vlgmr.msra.gmra.mrb[0].mxu0 %vm130_vm0, %v93_v11  ;;  %v921_v32 = vld [vmem:[#allocation8 + $0xb0] ss:$8 sps:$4 sm:$0xff]   ;;  %v922_v33 = vld [vmem:[#allocation8 + $0xc4] ss:$8 sps:$4 sm:$0xff]   ;;  %v924_v34 = vld [vmem:[#allocation8 + $0xc0] ss:$8 sps:$4 sm:$0xff]  }
  0x57   :  { %v925_v35 = vld [vmem:[#allocation8 + $0xd4] ss:$8 sps:$4 sm:$0xff]   ;;  %v927_v36 = vld [vmem:[#allocation8 + $0xd0] ss:$8 sps:$4 sm:$0xff]   ;;  %v928_v37 = vld [vmem:[#allocation8 + $0xe4] ss:$8 sps:$4 sm:$0xff]  }
  0x58   :  { %392 = vmatpush1.bf16.msra.mxu1 %v894_v14  ;;  %v930_v38 = vld [vmem:[#allocation8 + $0xe0] ss:$8 sps:$4 sm:$0xff]   ;;  %v931_v39 = vld [vmem:[#allocation8 + $0xf4] ss:$8 sps:$4 sm:$0xff]   ;;  %v933_v40 = vld [vmem:[#allocation8 + $0xf0] ss:$8 sps:$4 sm:$0xff]  }
  0x59   :  { %393 = vmatprep.subr.bf16.mxu1 %v895_v15  ;;  %v934_v41 = vld [vmem:[#allocation9] ss:$8 sps:$4 sm:$0xff]   ;;  %v936_v42 = vld [vmem:[#allocation9 + $0x4] ss:$8 sps:$4 sm:$0xff]   ;;  %v939_v43 = vld [vmem:[#allocation9 + $0x14] ss:$8 sps:$4 sm:$0xff]  }
  0x5a   :  { %640 = vmatprep.subr.bf16.mxu0 %v936_v42  ;;  %v937_v44 = vld [vmem:[#allocation9 + $0x10] ss:$8 sps:$4 sm:$0xff]   ;;  %v942_v45 = vld [vmem:[#allocation9 + $0x24] ss:$8 sps:$4 sm:$0xff]   ;;  %v940_v46 = vld [vmem:[#allocation9 + $0x20] ss:$8 sps:$4 sm:$0xff]  }
  0x5b   :  { %641 = vmatpush1.bf16.msra.mxu0 %v934_v41  ;;  %v945_v47 = vld [vmem:[#allocation9 + $0x34] ss:$8 sps:$4 sm:$0xff]   ;;  %v943_v48 = vld [vmem:[#allocation9 + $0x30] ss:$8 sps:$4 sm:$0xff]   ;;  %v948_v49 = vld [vmem:[#allocation9 + $0x44] ss:$8 sps:$4 sm:$0xff]  }
  0x5c   :  { %394 = vmatpush1.bf16.msra.mxu1 %v897_v16  ;;  %642 = vmatprep.subr.bf16.mxu0 %v939_v43  ;;  %v946_v50 = vld [vmem:[#allocation9 + $0x40] ss:$8 sps:$4 sm:$0xff]   ;;  %v951_v51 = vld [vmem:[#allocation9 + $0x54] ss:$8 sps:$4 sm:$0xff]   ;;  %v949_v52 = vld [vmem:[#allocation9 + $0x50] ss:$8 sps:$4 sm:$0xff]  }
  0x5d   :  { %395 = vmatprep.subr.bf16.mxu1 %v898_v17  ;;  %v954_v53 = vld [vmem:[#allocation9 + $0x64] ss:$8 sps:$4 sm:$0xff]   ;;  %v952_v54 = vld [vmem:[#allocation9 + $0x60] ss:$8 sps:$4 sm:$0xff]   ;;  %v957_v55 = vld [vmem:[#allocation9 + $0x74] ss:$8 sps:$4 sm:$0xff]  }
  0x5e   :  { %v955_v56 = vld [vmem:[#allocation9 + $0x70] ss:$8 sps:$4 sm:$0xff]   ;;  %v960_v57 = vld [vmem:[#allocation9 + $0x84] ss:$8 sps:$4 sm:$0xff]   ;;  %v958_v58 = vld [vmem:[#allocation9 + $0x80] ss:$8 sps:$4 sm:$0xff]  }
  0x5f   :  { %643 = vmatpush1.bf16.msra.mxu0 %v937_v44  ;;  %v963_v59 = vld [vmem:[#allocation9 + $0x94] ss:$8 sps:$4 sm:$0xff]   ;;  %v961_v60 = vld [vmem:[#allocation9 + $0x90] ss:$8 sps:$4 sm:$0xff]   ;;  %v966_v61 = vld [vmem:[#allocation9 + $0xa4] ss:$8 sps:$4 sm:$0xff]  }
  0x60   :  { %396 = vmatpush1.bf16.msra.mxu1 %v900_v18  ;;  %644 = vmatprep.subr.bf16.mxu0 %v942_v45  ;;  %v964_v62 = vld [vmem:[#allocation9 + $0xa0] ss:$8 sps:$4 sm:$0xff]   ;;  %v969_v63 = vld [vmem:[#allocation9 + $0xb4] ss:$8 sps:$4 sm:$0xff]   ;;  %v967_v0 = vld [vmem:[#allocation9 + $0xb0] ss:$8 sps:$4 sm:$0xff]  }
  0x61   :  { %397 = vmatprep.subr.bf16.mxu1 %v901_v19  ;;  %v972_v1 = vld [vmem:[#allocation9 + $0xc4] ss:$8 sps:$4 sm:$0xff]   ;;  %v970_v2 = vld [vmem:[#allocation9 + $0xc0] ss:$8 sps:$4 sm:$0xff]   ;;  %v975_v3 = vld [vmem:[#allocation9 + $0xd4] ss:$8 sps:$4 sm:$0xff]  }
  0x62   :  { %v973_v4 = vld [vmem:[#allocation9 + $0xd0] ss:$8 sps:$4 sm:$0xff]   ;;  %v101_v6 = vshrl.u32 %v100_v5, 7  ;;  %vm779_vm1 = vcmask 122880  }
  0x63   :  { %645 = vmatpush1.bf16.msra.mxu0 %v940_v46  ;;  %v98_v8 = vld [vmem:[%s1268_s2] sm:$0x3] }
  0x64   :  { %398 = vmatpush1.bf16.msra.mxu1 %v903_v20  ;;  %646 = vmatprep.subr.bf16.mxu0 %v945_v47  ;;  %v1235_v7 = vsub.s32 0, %v101_v6  ;;  %v106_v9 = vsub.s32 1, %v101_v6  ;;  %v687_v47 = vld [vmem:[%s1273_s7] sm:$0x3] }
  0x65   :  { %399 = vmatprep.subr.bf16.mxu1 %v904_v21 }
  0x66   :  { %v103_v10 = vrot.slane %v98_v8, %v1235_v7  ;;  %v107_v11 = vrot.slane %v98_v8, %v106_v9 }
  0x67   :  { %647 = vmatpush1.bf16.msra.mxu0 %v943_v48  ;;  %v706_v48 = vrot.slane %v687_v47, %v106_v9 }
  0x68   :  { %400 = vmatpush1.bf16.msra.mxu1 %v906_v22  ;;  %648 = vmatprep.subr.bf16.mxu0 %v948_v49  ;;  %v688_v49 = vld [vmem:[#allocation2] sm:$0x1] }
  0x69   :  { %401 = vmatprep.subr.bf16.mxu1 %v907_v23  ;;  %691 = vperm.xlu0 %879, %v688_v49  }
  0x6b   :  { %649 = vmatpush1.bf16.msra.mxu0 %v946_v50  ;;  %v468_v50 = vld [vmem:[%s1272_s6] sm:$0x3]  ;;  %s1107_s6 = smov [#allocation11]  }
  0x6c   :  { %402 = vmatpush1.bf16.msra.mxu1 %v909_v24  ;;  %650 = vmatprep.subr.bf16.mxu0 %v951_v51  ;;  %v473_v51 = vrot.slane %v468_v50, %v1235_v7  ;;  %s787_s7 = sshll.u32 %s1107_s6, 4  ;;  %s788_s7 = int_to_ptr.vmem [resolvable:$true] %s787_s7 }
  0x6d   :  { %403 = vmatprep.subr.bf16.mxu1 %v910_v25  ;;  %s1070_s19 = scalar_lea.vmem %s788_s7, 16  ;;  %s1074_s8 = scalar_lea.vmem %s788_s7, 32 }
  0x6e   :  { %p1071_p4 = scmp.ne.s32.totalorder %s788_s7, %s1070_s19  ;;  %p1075_p5 = scmp.lt.s32.totalorder %s788_s7, %s788_s7 }
  0x6f   :  { %651 = vmatpush1.bf16.msra.mxu0 %v949_v52  ;;  %v477_v52 = vrot.slane %v468_v50, %v106_v9  ;;  %p1076_p6 = scmp.lt.s32.totalorder %s1074_s8, %s1070_s19 }
  0x70   :  { %404 = vmatpush1.bf16.msra.mxu1 %v912_v26  ;;  %652 = vmatprep.subr.bf16.mxu0 %v954_v53  ;;  %v978_v26 = vld [vmem:[#allocation9 + $0xe4] ss:$8 sps:$4 sm:$0xff]  }
  0x71   :  { %405 = vmatprep.subr.bf16.mxu1 %v913_v27  ;;  %v976_v27 = vld [vmem:[#allocation9 + $0xe0] ss:$8 sps:$4 sm:$0xff]   ;;  %p1077_p7 = por %p1076_p6, %p1075_p5 }
  0x73   :  { %653 = vmatpush1.bf16.msra.mxu0 %v952_v54  ;;  %p1078_p8 = pnand %p1077_p7, %p1071_p4 }
  0x74   :  { %406 = vmatpush1.bf16.msra.mxu1 %v915_v28  ;;  %654 = vmatprep.subr.bf16.mxu0 %v957_v55  ;;  %v981_v28 = vld [vmem:[#allocation9 + $0xf4] ss:$8 sps:$4 sm:$0xff]  }
  0x75   :  { %407 = vmatprep.subr.bf16.mxu1 %v916_v29  ;;  %v979_v29 = vld [vmem:[#allocation9 + $0xf0] ss:$8 sps:$4 sm:$0xff]  }
  0x77   :  { %655 = vmatpush1.bf16.msra.mxu0 %v955_v56 }
  0x78   :  { %408 = vmatpush1.bf16.msra.mxu1 %v918_v30  ;;  %656 = vmatprep.subr.bf16.mxu0 %v960_v57  ;;  %v215_v30 = vld [vmem:[%s1270_s4] sm:$0x3] }
  0x79   :  { %409 = vmatprep.subr.bf16.mxu1 %v919_v31  ;;  %v220_v31 = vrot.slane %v215_v30, %v1235_v7 }
  0x7b   :  { %657 = vmatpush1.bf16.msra.mxu0 %v958_v58 }
  0x7c   :  { %410 = vmatpush1.bf16.msra.mxu1 %v921_v32  ;;  %658 = vmatprep.subr.bf16.mxu0 %v963_v59  ;;  %v224_v32 = vrot.slane %v215_v30, %v106_v9 }
  0x7d   :  { %411 = vmatprep.subr.bf16.mxu1 %v922_v33 }
  0x7f   :  { %659 = vmatpush1.bf16.msra.mxu0 %v961_v60 }
  0x80   :  { %412 = vmatpush1.bf16.msra.mxu1 %v924_v34  ;;  %660 = vmatprep.subr.bf16.mxu0 %v966_v61 }
  0x81   :  { %413 = vmatprep.subr.bf16.mxu1 %v925_v35 }
  0x83   :  { %661 = vmatpush1.bf16.msra.mxu0 %v964_v62 }
  0x84   :  { %414 = vmatpush1.bf16.msra.mxu1 %v927_v36  ;;  %662 = vmatprep.subr.bf16.mxu0 %v969_v63 }
  0x85   :  { %415 = vmatprep.subr.bf16.mxu1 %v928_v37 }
  0x87   :  { %663 = vmatpush1.bf16.msra.mxu0 %v967_v0 }
  0x88   :  { %416 = vmatpush1.bf16.msra.mxu1 %v930_v38  ;;  %664 = vmatprep.subr.bf16.mxu0 %v972_v1 }
  0x89   :  { %417 = vmatprep.subr.bf16.mxu1 %v931_v39 }
  0x8b   :  { %665 = vmatpush1.bf16.msra.mxu0 %v970_v2 }
  0x8c   :  { %418 = vmatpush1.bf16.msra.mxu1 %v933_v40  ;;  %666 = vmatprep.subr.bf16.mxu0 %v975_v3  ;;  %v702_v3 = vrot.slane %v687_v47, %v1235_v7 }
  0x8f   :  { %667 = vmatpush1.bf16.msra.mxu0 %v973_v4 }
  0x90   :  { %668 = vmatprep.subr.bf16.mxu0 %v978_v26 }
  0x93   :  { %669 = vmatpush1.bf16.msra.mxu0 %v976_v27 }
  0x94   :  { %670 = vmatprep.subr.bf16.mxu0 %v981_v28 }
  0x97   :  { %671 = vmatpush1.bf16.msra.mxu0 %v979_v29 }
  0xe8   :  { %v692_v4 = vpop.permute.xlu0 %691 }
  0xe9   :  { %v697_v5 = vrot.slane %v692_v4, %v1235_v7 }
 0x129   :  { %v168_v12 = vpop.f32.mrb[0].mxu0 }
 0x12a   :  { %v169_v13 = vadd.f32 %v168_v12, %v103_v10  ;;  %v170_v14 = vpop.f32.mrb[1].mxu0 }
 0x12b   :  { %v171_v15 = vadd.f32 %v170_v14, %v107_v11  ;;  %v172_v16 = vpop.f32.mrb[2].mxu0 }
 0x12c   :  { %v173_v17 = vadd.f32 %v172_v16, %v103_v10  ;;  %v174_v18 = vpop.f32.mrb[3].mxu0  ;;  %v177_v20 = vmax.f32 %v169_v13, 0.0 }
 0x12d   :  { %v175_v19 = vadd.f32 %v174_v18, %v107_v11  ;;  %v178_v22 = vmax.f32 %v171_v15, 0.0 }
 0x12e   :  { %v179_v21 = vmax.f32 %v173_v17, 0.0 }
 0x12f   :  { %v180_v23 = vmax.f32 %v175_v19, 0.0 }
 0x130   :  { %v181_v24 = vpack.c.bf16 %v179_v21, %v177_v20 }
 0x131   :  { %v182_v25 = vpack.c.bf16 %v180_v23, %v178_v22 }
 0x133   :  { %419 = vmatprep.mubr.bf16.mxu1 %v182_v25 }
 0x134   :  { %420 = vmatmul.mubr.bf16.vlgmr.msra.gmra.mrb[0].mxu1 %v181_v24 }
 0x135   :  { %773 = vmatprep.mubr.f32.mxu1 %v706_v48 }
 0x207   :  { %v421_v33 = vpop.f32.mrb[0].mxu1 }
 0x208   :  { %v422_v34 = vadd.f32 %v421_v33, %v220_v31  ;;  %v423_v35 = vpop.f32.mrb[1].mxu1 }
 0x209   :  { %v424_v36 = vadd.f32 %v423_v35, %v224_v32  ;;  %v425_v37 = vpop.f32.mrb[2].mxu1 }
 0x20a   :  { %v426_v38 = vadd.f32 %v425_v37, %v220_v31  ;;  %v427_v39 = vpop.f32.mrb[3].mxu1  ;;  %v430_v41 = vmax.f32 %v422_v34, 0.0 }
 0x20b   :  { %v428_v40 = vadd.f32 %v427_v39, %v224_v32  ;;  %v431_v43 = vmax.f32 %v424_v36, 0.0 }
 0x20c   :  { %v432_v42 = vmax.f32 %v426_v38, 0.0 }
 0x20d   :  { %v433_v44 = vmax.f32 %v428_v40, 0.0 }
 0x20e   :  { %v434_v45 = vpack.c.bf16 %v432_v42, %v430_v41 }
 0x20f   :  { %v435_v46 = vpack.c.bf16 %v433_v44, %v431_v43 }
 0x211   :  { %672 = vmatprep.mubr.bf16.mxu0 %v435_v46 }
 0x212   :  { %673 = vmatmul.mubr.bf16.vlgmr.msra.gmra.mrb[4].mxu0 %v434_v45 }
 0x2e5   :  { %v674_v53 = vpop.f32.mrb[4].mxu0 }
 0x2e6   :  { %v675_v54 = vadd.f32 %v674_v53, %v473_v51  ;;  %v676_v55 = vpop.f32.mrb[5].mxu0 }
 0x2e7   :  { %v677_v56 = vadd.f32 %v676_v55, %v477_v52  ;;  %v678_v57 = vpop.f32.mrb[6].mxu0 }
 0x2e8   :  { %v679_v58 = vadd.f32 %v678_v57, %v473_v51  ;;  %v680_v59 = vpop.f32.mrb[7].mxu0  ;;  %v683_v61 = vmax.f32 %v675_v54, 0.0 }
 0x2e9   :  { %v681_v60 = vadd.f32 %v680_v59, %v477_v52  ;;  %v684_v63 = vmax.f32 %v677_v56, 0.0 }
 0x2ea   :  { %v685_v62 = vmax.f32 %v679_v58, 0.0 }
 0x2eb   :  { %v686_v0 = vmax.f32 %v681_v60, 0.0 }
 0x2ec   :  { %v869_v1 = vpack.c.bf16 %v685_v62, %v683_v61 }
 0x2ed   :  { %v867_v2 = vpack.c.bf16 %v686_v0, %v684_v63 }
 0x2ef   :  { %868 = vmatprep.subr.bf16.mxu1 %v867_v2 }
 0x2f0   :  { %870 = vmatpush1.bf16.xpose.msra.mxu1 %v869_v1 }
 0x2f7   :  { %774 = vmatmul.mubr.f32.vlgmr.msra.gmra.mrb[4].mxu1 %v702_v3 }
 0x3ca   :  { %v775_v6 = vpop.f32.mrb[4].mxu1 }
 0x3cb   :  { %v776_v8 = vadd.f32 %v775_v6, %v697_v5  ;;  %v777_v9 = vpop.f32.mrb[5].mxu1 }
 0x3cd   :  { %780 = vst.msk [vmem:[#allocation11] sm:$0x1] %vm779_vm1, %v776_v8 }
 0x3ce   :  { %1081 = shalt.err (!%p1078_p8)
}
 0x3cf   :  { %s1082_s24 = scalar_lea.hbm %s1275_s9, 16 }
 0x3d0   :  { %p1083_p9 = scmp.ne.s32.totalorder %s1275_s9, %s1082_s24  ;;  %p1086_p10 = scmp.lt.u32.totalorder %s1082_s24, %s1275_s9 }
 0x3d2   :  { %p1088_p11 = pnand %p1086_p10, %p1083_p9 }
 0x3d4   :  { %1091 = shalt.err (!%p1088_p11)
}
 0x3d5   :  { %790 = dma.vmem_to_hbm [thread:$0]  %s788_s7, 16, %s1275_s9, [#allocation5]  }
 0x3d6   :  { %1098 = dma.done.wait [#allocation5], 16  }
 0x3d7   :  { %1099 = vsyncadd [#allocation5], 4294967280 }
 0x3d8   :  { %794 = vsyncpa [#allocation4], 1 }
 0x3d9   :  { %795 = vsyncpa [#allocation7], 1 }
 0x3da   :  { %796 = vsyncpa [#allocation10], 1 }
 0x3db   :  { %797 = vsyncpa [#allocation5], 1 }

</bundles_post_ra>
